<compile_context>
chip_gen: v7x
topology: tpu7x:2x2x1
jax: 0.10.0
libtpu: 0.0.40
codegen_flags: <defaults>
</compile_context>

<pallas_src>
import jax
import jax.numpy as jnp
from jax import lax
from jax.experimental import pallas as pl
from jax.experimental.pallas import tpu as pltpu


# ---------------------------------------------------------------------------
# Small helpers
# ---------------------------------------------------------------------------

def _cdiv(a, b):
    return -(-a // b)


def _round_up(x, m):
    return _cdiv(x, m) * m


def _sublane_align(dtype):
    """Rows per vreg sublane group for this dtype: 8 f32, 16 bf16, 32 int8/fp8."""
    bits = jnp.dtype(dtype).itemsize * 8
    return max(8, 256 // bits)


def _pad2d(x, rows, cols):
    pr, pc = rows - x.shape[0], cols - x.shape[1]
    if pr or pc:
        x = jnp.pad(x, ((0, pr), (0, pc)))
    return x


_VMEM_LIMIT = 32 * 1024 * 1024          # explicit scoped-VMEM limit (safe on v5e..v7x)
_EPS_SQ = 1e-24                         # (F.normalize eps=1e-12)^2; 1/max(||g||,eps)==rsqrt(max(sq,eps^2))


# ---------------------------------------------------------------------------
# Kernels
# ---------------------------------------------------------------------------

def _l2_normalize_kernel(x_ref, out_ref):
    """mask=None fast path: identity mask => output = L2-normalize(emb, dim=1)."""
    x = x_ref[...].astype(jnp.float32)
    sq = jnp.sum(x * x, axis=1, keepdims=True)
    inv_norm = lax.rsqrt(jnp.maximum(sq, _EPS_SQ))
    out_ref[...] = (x * inv_norm).astype(out_ref.dtype)


def _avg_readout_fullk_kernel(mask_ref, emb_ref, out_ref):
    """grid = (M//tm,).  emb block is resident (constant index_map); no scratch."""
    mask = mask_ref[...]                                   # native dtype to the MXU
    vsum = jnp.dot(mask, emb_ref[...], preferred_element_type=jnp.float32)
    rsum = jnp.sum(mask, axis=1, keepdims=True, dtype=jnp.float32)
    g = vsum * pl.reciprocal(rsum, approx=True)            # per-row scale; error cancels in normalize
    sq = jnp.sum(g * g, axis=1, keepdims=True)
    inv_norm = lax.rsqrt(jnp.maximum(sq, _EPS_SQ))
    out_ref[...] = (g * inv_norm).astype(out_ref.dtype)


def _avg_readout_ktiled_kernel(mask_ref, emb_ref, out_ref, vsum_ref, rsum_ref):
    """grid = (M//tm, N//tk).  Accumulate vsum / row_sum over the k axis."""
    k = pl.program_id(1)

    @pl.when(k == 0)
    def _():
        vsum_ref[...] = jnp.zeros_like(vsum_ref)
        rsum_ref[...] = jnp.zeros_like(rsum_ref)

    mask = mask_ref[...]                                   # native dtype to the MXU
    vsum_ref[...] += jnp.dot(mask, emb_ref[...],
                             preferred_element_type=jnp.float32)
    rsum_ref[...] += jnp.sum(mask, axis=1, keepdims=True, dtype=jnp.float32)

    @pl.when(k == pl.num_programs(1) - 1)
    def _():
        g = vsum_ref[...] * pl.reciprocal(rsum_ref[...], approx=True)
        sq = jnp.sum(g * g, axis=1, keepdims=True)
        inv_norm = lax.rsqrt(jnp.maximum(sq, _EPS_SQ))
        out_ref[...] = (g * inv_norm).astype(out_ref.dtype)


# ---------------------------------------------------------------------------
# Wrappers
# ---------------------------------------------------------------------------

def _l2_normalize_rows(emb):
    """mask=None => identity mask: vsum==emb, row_sum==1 -> pure streaming normalize."""
    N, D = emb.shape
    eb = jnp.dtype(emb.dtype).itemsize
    row_align = _sublane_align(emb.dtype)
    Dp = _round_up(D, 128)

    # ~2 MiB blocks: per-step overhead negligible, VMEM footprint tiny.
    tn = (2 * 1024 * 1024) // max(1, Dp * eb)
    tn = max(row_align, min(tn, 4096))
    tn = (tn // row_align) * row_align
    if tn >= N:
        if N >= 2 * row_align:                       # give v7x megacore 2 blocks
            tn = _round_up(_cdiv(N, 2), row_align)
        else:
            tn = _round_up(N, row_align)
    Np = _round_up(N, tn)

    x = _pad2d(emb, Np, Dp)
    out = pl.pallas_call(
        _l2_normalize_kernel,
        out_shape=jax.ShapeDtypeStruct((Np, Dp), emb.dtype),
        grid_spec=pltpu.PrefetchScalarGridSpec(
            num_scalar_prefetch=0,
            grid=(Np // tn,),
            in_specs=[pl.BlockSpec((tn, Dp), lambda i: (i, 0))],
            out_specs=pl.BlockSpec((tn, Dp), lambda i: (i, 0)),
        ),
        compiler_params=pltpu.CompilerParams(
            dimension_semantics=("parallel",),
            vmem_limit_bytes=_VMEM_LIMIT),
        cost_estimate=pl.CostEstimate(
            flops=3 * Np * Dp,
            transcendentals=Np,
            bytes_accessed=2 * Np * Dp * eb),
    )(x)
    return out[:N, :D]


def avg_readout(emb, mask=None, *, tm=None, tk=None,
                vmem_budget_bytes=12 * 1024 * 1024):
    """Pallas implementation of AvgReadout.forward(emb, mask)."""
    if mask is None:
        return _l2_normalize_rows(emb)

    M, N = mask.shape
    N_e, D = emb.shape
    assert N == N_e, "mask.shape[1] must equal emb.shape[0]"
    out_dtype = emb.dtype

    # v7x MXU has no integer datapath; keep it portable with a float mask.
    if not jnp.issubdtype(mask.dtype, jnp.floating):
        # TODO(synk): keep int8 masks native on v5e/v6e (their MXUs take int8 directly).
        mask = mask.astype(jnp.float32)

    mask_b = jnp.dtype(mask.dtype).itemsize
    emb_b = jnp.dtype(emb.dtype).itemsize
    out_b = jnp.dtype(out_dtype).itemsize
    row_align = _sublane_align(mask.dtype)
    Dp = _round_up(D, 128)             # lane-dense stores + full MXU result dim
    budget = vmem_budget_bytes

    # ----- row tile -----
    if tm is None:
        tm = min(512, _round_up(M, row_align))
    else:
        tm = max(row_align, _round_up(tm, row_align))
    # v7x megacore: make sure the "parallel" row axis has >= 2 blocks when M allows.
    if tm >= M and M >= 2 * row_align:
        tm = _round_up(_cdiv(M, 2), row_align)

    # ----- path selection: emb-resident full-K vs K-tiled accumulator -----
    def _fullk_bytes(tm_):
        return (2 * tm_ * N * mask_b       # mask block, double-buffered
                + 2 * N * Dp * emb_b       # emb slab (constant index_map)
                + 2 * tm_ * Dp * out_b)    # output block

    use_fullk = False
    if tk is None:
        tm_try = tm
        while tm_try > row_align and _fullk_bytes(tm_try) > budget:
            tm_try = max(row_align, ((tm_try // 2) // row_align) * row_align)
        if _fullk_bytes(tm_try) <= budget:
            use_fullk, tm = True, tm_try

    if use_fullk:
        Mp = _round_up(M, tm)
        mask_p = _pad2d(mask, Mp, N)
        emb_p = _pad2d(emb, N, Dp)
        out = pl.pallas_call(
            _avg_readout_fullk_kernel,
            out_shape=jax.ShapeDtypeStruct((Mp, Dp), out_dtype),
            grid_spec=pltpu.PrefetchScalarGridSpec(
                num_scalar_prefetch=0,
                grid=(Mp // tm,),
                in_specs=[
                    pl.BlockSpec((tm, N), lambda i: (i, 0)),   # mask row-tile
                    pl.BlockSpec((N, Dp), lambda i: (0, 0)),   # emb resident: DMAed once
                ],
                out_specs=pl.BlockSpec((tm, Dp), lambda i: (i, 0)),
            ),
            compiler_params=pltpu.CompilerParams(
                dimension_semantics=("parallel",),
                vmem_limit_bytes=_VMEM_LIMIT),
            cost_estimate=pl.CostEstimate(
                flops=2 * Mp * N * Dp,
                transcendentals=2 * Mp,
                bytes_accessed=(Mp * N * mask_b + N * Dp * emb_b
                                + Mp * Dp * out_b)),
        )(mask_p, emb_p)
        return out[:M, :D]

    # ----- K-tiled fallback (very large N, or user-supplied tk) -----
    # Keep output block + accumulators within ~half the budget.
    while tm > row_align and (2 * tm * Dp * out_b + tm * Dp * 4 + tm * 128 * 4) > budget // 2:
        tm = max(row_align, ((tm // 2) // row_align) * row_align)

    if tk is None:
        def _ktiled_bytes(tk_):
            return (2 * tm * tk_ * mask_b + 2 * tk_ * Dp * emb_b
                    + 2 * tm * Dp * out_b + tm * Dp * 4 + tm * 128 * 4)
        tk = 2048
        while tk > 128 and _ktiled_bytes(tk) > budget:
            tk //= 2
        tk = max(128, (tk // 128) * 128)
    else:
        tk = max(128, _round_up(tk, 128))

    Mp = _round_up(M, tm)
    Np = _round_up(N, tk)
    mask_p = _pad2d(mask, Mp, Np)
    emb_p = _pad2d(emb, Np, Dp)
    grid = (Mp // tm, Np // tk)

    out = pl.pallas_call(
        _avg_readout_ktiled_kernel,
        out_shape=jax.ShapeDtypeStruct((Mp, Dp), out_dtype),
        grid_spec=pltpu.PrefetchScalarGridSpec(
            num_scalar_prefetch=0,
            grid=grid,
            in_specs=[
                pl.BlockSpec((tm, tk), lambda i, k: (i, k)),   # mask tile
                pl.BlockSpec((tk, Dp), lambda i, k: (k, 0)),   # emb k-slab
            ],
            out_specs=pl.BlockSpec((tm, Dp), lambda i, k: (i, 0)),
            scratch_shapes=[
                pltpu.VMEM((tm, Dp), jnp.float32),   # vsum accumulator
                pltpu.VMEM((tm, 1), jnp.float32),    # row_sum accumulator
            ],
        ),
        compiler_params=pltpu.CompilerParams(
            dimension_semantics=("parallel", "arbitrary"),
            vmem_limit_bytes=_VMEM_LIMIT),
        cost_estimate=pl.CostEstimate(
            flops=2 * Mp * Np * Dp,
            transcendentals=2 * Mp,
            bytes_accessed=(Mp * Np * mask_b
                            + (Mp // tm) * Np * Dp * emb_b
                            + Mp * Dp * out_b)),
    )(mask_p, emb_p)
    return out[:M, :D]


# ---------------------------------------------------------------------------
# Pure-JAX reference
# ---------------------------------------------------------------------------

def avg_readout_ref(emb, mask=None):
    if mask is None:
        mask = jnp.eye(emb.shape[0], dtype=emb.dtype)
    vsum = mask @ emb
    row_sum = jnp.sum(mask, axis=1, keepdims=True)
    g = vsum / row_sum
    norm = jnp.maximum(jnp.linalg.norm(g, axis=1, keepdims=True), 1e-12)
    return g / norm


if __name__ == "__main__":
    key = jax.random.PRNGKey(0)
    k_emb, k_mask, k_emb2, k_mask2 = jax.random.split(key, 4)

    # Case 1: default (identity) mask — streaming L2-normalize fast path.
    N, D = 8, 32
    emb = jax.random.normal(k_emb, (N, D), dtype=jnp.float32)
    out1 = avg_readout(emb, mask=None)
    jax.block_until_ready(out1)
    assert out1.shape == (N, D)
    assert jnp.allclose(out1, avg_readout_ref(emb, None), atol=1e-4)

    # Case 2: explicit soft-membership mask — small single-block full-K path.
    M = 8
    mask = jax.random.uniform(k_mask, (M, N), dtype=jnp.float32) + 0.1
    out2 = avg_readout(emb, mask)
    jax.block_until_ready(out2)
    assert out2.shape == (M, D)
    assert jnp.allclose(out2, avg_readout_ref(emb, mask), atol=1e-4)

    # Case 3a: larger shapes, default tiling -> emb-resident full-K path (2 row blocks).
    M2, N2, D2 = 16, 1024, 128
    emb2 = jax.random.normal(k_emb2, (N2, D2), dtype=jnp.float32)
    mask2 = jax.random.uniform(k_mask2, (M2, N2), dtype=jnp.float32) + 0.1
    out3a = avg_readout(emb2, mask2)
    jax.block_until_ready(out3a)
    assert jnp.allclose(out3a, avg_readout_ref(emb2, mask2), atol=1e-4)

    # Case 3b: force the K-tiled accumulator path (grid = (2, 2)).
    out3b = avg_readout(emb2, mask2, tm=8, tk=512)
    jax.block_until_ready(out3b)
    assert jnp.allclose(out3b, avg_readout_ref(emb2, mask2), atol=1e-4)

    print("KERNEL_OK")
</pallas_src>

<mosaic_0001>
module attributes {stable_mosaic.version = 11 : i64} {
  func.func @_l2_normalize_kernel(%arg0: i32, %arg1: memref<8x128xf32, #tpu.memory_space<vmem>>, %arg2: memref<8x128xf32, #tpu.memory_space<vmem>>) attributes {dimension_semantics = [#tpu.dimension_semantics<parallel>], iteration_bounds = array<i64: 1>, scalar_prefetch = 0 : i64, scratch_operands = 0 : i64, tpu.core_type = #tpu.core_type<tc>, window_params = [{transform_indices = @transform_0, window_bounds = array<i64: 8, 128>}, {transform_indices = @transform_1, window_bounds = array<i64: 8, 128>}]} {
    %c0 = arith.constant 0 : index
    %c0_0 = arith.constant 0 : index
    %0 = vector.load %arg1[%c0, %c0_0] : memref<8x128xf32, #tpu.memory_space<vmem>>, vector<8x128xf32>
    %1 = arith.mulf %0, %0 : vector<8x128xf32>
    %cst = arith.constant dense<0.000000e+00> : vector<8xf32>
    %2 = vector.multi_reduction <add>, %1, %cst [1] : vector<8x128xf32> to vector<8xf32>
    %3 = vector.shape_cast %2 : vector<8xf32> to vector<8x1xf32>
    %cst_1 = arith.constant 1.000000e-24 : f32
    %4 = vector.broadcast %cst_1 : f32 to vector<8x1xf32>
    %5 = arith.maximumf %3, %4 : vector<8x1xf32>
    %6 = math.rsqrt %5 : vector<8x1xf32>
    %7 = vector.broadcast %6 : vector<8x1xf32> to vector<8x128xf32>
    %8 = arith.mulf %0, %7 : vector<8x128xf32>
    %c0_2 = arith.constant 0 : index
    %c0_3 = arith.constant 0 : index
    %9 = vector.load %arg2[%c0_2, %c0_3] : memref<8x128xf32, #tpu.memory_space<vmem>>, vector<8x128xf32>
    tpu.vector_store %arg2[%c0_2, %c0_3], %8 {strides = array<i32>} : memref<8x128xf32, #tpu.memory_space<vmem>>, vector<8x128xf32>,
    return
  }
  func.func @transform_0(%arg0: i32) -> (i32, i32) {
    %c0_i32 = arith.constant 0 : i32
    %c0_i32_0 = arith.constant 0 : i32
    return %arg0, %c0_i32 : i32, i32
  }
  func.func @transform_1(%arg0: i32) -> (i32, i32) {
    %c0_i32 = arith.constant 0 : i32
    %c0_i32_0 = arith.constant 0 : i32
    return %arg0, %c0_i32 : i32, i32
  }
}

</mosaic_0001>

<bundles_post_ra>
// kernel: tpu_custom_call.1
= control target key start
LH: loop header
LB: loop body
LE: loop exit
PB: predicated region body
PF: predicated region fallthrough
CT: control target
= control target key end

     0   :  { %6 = vsyncpa [#allocation3], 0  ;;  %s132_s0 = inlined_call_operand.hbm [shape: f32[8,128], index: 0, kind: input, shape index: {}]   ;;  %s133_s1 = inlined_call_operand.hbm [shape: f32[8,128], index: 1, kind: output, shape index: {}]  }
   0x1   :  { %7 = vsyncpa [#allocation4], 0  ;;  %s96_s6 = smov [#allocation2]   ;;  %s48_s10 = scalar_lea.hbm %s132_s0, 128 }
   0x2   :  { %s14_s7 = sshll.u32 %s96_s6, 4  ;;  %p49_p0 = scmp.ne.s32.totalorder %s132_s0, %s48_s10  ;;  %s15_s7 = int_to_ptr.vmem [resolvable:$true] %s14_s7 }
   0x3   :  { %p52_p1 = scmp.lt.u32.totalorder %s48_s10, %s132_s0 }
   0x5   :  { %p54_p2 = pnand %p52_p1, %p49_p0 }
   0x7   :  { %57 = shalt.err (!%p54_p2)
}
   0x8   :  { %s58_s15 = scalar_lea.vmem %s15_s7, 128  ;;  %p63_p4 = scmp.lt.s32.totalorder %s15_s7, %s15_s7 }
   0x9   :  { %p59_p3 = scmp.ne.s32.totalorder %s15_s7, %s58_s15  ;;  %p64_p5 = scmp.lt.s32.totalorder %s58_s15, %s58_s15 }
   0xb   :  { %p65_p6 = por %p64_p5, %p63_p4 }
   0xd   :  { %p66_p7 = pnand %p65_p6, %p59_p3 }
   0xf   :  { %69 = shalt.err (!%p66_p7)
}
  0x10   :  { %17 = dma.hbm_to_vmem [thread:$0]  %s132_s0, 128, %s15_s7, [#allocation3]  }
  0x11   :  { %92 = dma.done.wait [#allocation3], 128  }
  0x12   :  { %93 = vsyncadd [#allocation3], 4294967168  ;;  %v21_v0 = vld [vmem:[#allocation2] sm:$0xff]  ;;  %s97_s18 = smov [#allocation5]  }
  0x13   :  { %v22_v1 = vmul.f32 %v21_v0, %v21_v0  ;;  %s35_s19 = sshll.u32 %s97_s18, 4  ;;  %s36_s19 = int_to_ptr.vmem [resolvable:$true] %s35_s19 }
  0x14   :  { %s70_s20 = scalar_lea.vmem %s36_s19, 128  ;;  %p75_p9 = scmp.lt.s32.totalorder %s36_s19, %s36_s19 }
  0x15   :  { %23 = vadd.xlane.f32.xlu0 %v22_v1  ;;  %p71_p8 = scmp.ne.s32.totalorder %s36_s19, %s70_s20  ;;  %p76_p10 = scmp.lt.s32.totalorder %s70_s20, %s70_s20 }
  0x17   :  { %p77_p11 = por %p76_p10, %p75_p9 }
  0x19   :  { %p78_p12 = pnand %p77_p11, %p71_p8 }
  0xa2   :  { %v24_v2 = vpop.xlane.xlu0 %23 }
  0xa3   :  { %v25_v3 = vmax.f32 %v24_v2, 1e-24 }
  0xa5   :  { %46 = vrsqrt.f32 %v25_v3 }
  0xaf   :  { %v47_v4 = vpop.eup %46 }
  0xb0   :  { %v27_v5 = vmul.f32 %v47_v4, %v21_v0 }
  0xb2   :  { %28 = vst [vmem:[#allocation5] sm:$0xff] %v27_v5 }
  0xb3   :  { %81 = shalt.err (!%p78_p12)
}
  0xb4   :  { %s82_s22 = scalar_lea.hbm %s133_s1, 128 }
  0xb5   :  { %p83_p13 = scmp.ne.s32.totalorder %s133_s1, %s82_s22  ;;  %p86_p0 = scmp.lt.u32.totalorder %s82_s22, %s133_s1 }
  0xb7   :  { %p88_p1 = pnand %p86_p0, %p83_p13 }
  0xb9   :  { %91 = shalt.err (!%p88_p1)
}
  0xba   :  { %38 = dma.vmem_to_hbm [thread:$0]  %s36_s19, 128, %s133_s1, [#allocation4]  }
  0xbb   :  { %94 = dma.done.wait [#allocation4], 128  }
  0xbc   :  { %95 = vsyncadd [#allocation4], 4294967168 }
  0xbd   :  { %42 = vsyncpa [#allocation3], 1 }
  0xbe   :  { %43 = vsyncpa [#allocation4], 1 }

</bundles_post_ra>
